<compile_context>
chip_gen: v7x
topology: tpu7x:2x2x1
jax: 0.10.0
libtpu: 0.0.40
codegen_flags: <defaults>
</compile_context>

<pallas_src>
import math

import jax
import jax.numpy as jnp
from jax.experimental import pallas as pl
from jax.experimental.pallas import tpu as pltpu


def _round_up(v: int, m: int) -> int:
    return ((v + m - 1) // m) * m


def _lora_linear_kernel(x_ref, w_ref, b_ref, h_ref, bb_ref, o_ref, acc_ref):
    """One (tm, tn) output tile; k (contraction over in_features) is the innermost grid axis."""
    k = pl.program_id(2)
    nk = pl.num_programs(2)

    @pl.when(k == 0)
    def _init_acc():
        # Bias add folded into the cheap k==0 init (broadcast over rows) instead of the epilogue.
        acc_ref[...] = jnp.broadcast_to(b_ref[...].astype(jnp.float32), acc_ref.shape)

    # Main matmul: bf16 x bf16 (or f32 x f32) with f32 accumulation on the MXU.
    acc_ref[...] += jnp.dot(x_ref[...], w_ref[...],
                            preferred_element_type=jnp.float32)          # [tm, tn]

    @pl.when(k == nk - 1)
    def _epilogue():
        # Rank-r up-projection (h already contains x @ A^T; scaling folded into bb).
        # Same-dtype operands -> single native MXU pass with f32 accumulation.
        out = acc_ref[...] + jnp.dot(h_ref[...], bb_ref[...],
                                     preferred_element_type=jnp.float32)
        o_ref[...] = out.astype(o_ref.dtype)


def prepare_lora_weights(W, b, A, B, *, alpha, rank, tn=512, tk=1024,
                         compute_dtype=jnp.bfloat16):
    """One-time (init-time) prep of the frozen weights.

    Transposes to [K, N] / [K, r] / [r, N], folds the LoRA scaling (alpha/rank) into B,
    casts to the MXU compute dtype (bf16 by default) and zero-pads K and N up to tile
    multiples so the kernel never sees ragged tiles. Bias stays f32 (added to f32 acc).
    """
    N, K = W.shape
    r = A.shape[0]
    scaling = alpha / rank
    cdt = jnp.dtype(compute_dtype) if compute_dtype is not None else W.dtype

    tn = min(tn, _round_up(N, 128))
    tk = min(tk, _round_up(K, 128))
    Np = _round_up(N, tn)
    Kp = _round_up(K, tk)

    w_t = jnp.pad(W.T.astype(cdt), ((0, Kp - K), (0, Np - N)))                 # [Kp, Np]
    a_t = A.T.astype(cdt)                                                      # [K, r]  (kernel-external)
    bb_t = jnp.pad((B.astype(jnp.float32).T * scaling).astype(cdt),
                   ((0, 0), (0, Np - N)))                                      # [r, Np]
    b2 = jnp.pad(b.astype(jnp.float32).reshape(1, N), ((0, 0), (0, Np - N)))   # [1, Np] f32
    return {"w_t": w_t, "a_t": a_t, "bb_t": bb_t, "b2": b2,
            "K": K, "N": N, "r": r, "tn": tn, "tk": tk, "cdt": cdt}


def lora_linear(x, params, *, tm=512):
    """y = x @ W^T + b + (alpha/rank) * (x @ A^T) @ B^T with a fused, tiled Pallas kernel."""
    K, N, r = params["K"], params["N"], params["r"]
    tn, tk, cdt = params["tn"], params["tk"], params["cdt"]
    w_t, a_t, bb_t, b2 = params["w_t"], params["a_t"], params["bb_t"], params["b2"]
    Kp, Np = w_t.shape

    assert x.shape[-1] == K, "feature dim mismatch"
    lead = x.shape[:-1]
    x2 = x.reshape(-1, K)
    M = x2.shape[0]
    tm = min(tm, _round_up(M, 8))
    Mp = _round_up(M, tm)

    xc = x2.astype(cdt)
    # Rank-r down-projection hoisted out of the kernel: tiny [M, K] @ [K, r] handled by XLA.
    h = jnp.dot(xc, a_t, preferred_element_type=jnp.float32).astype(cdt)       # [M, r]

    xp = jnp.pad(xc, ((0, Mp - M), (0, Kp - K)))                               # [Mp, Kp]
    hp = jnp.pad(h, ((0, Mp - M), (0, 0)))                                     # [Mp, r]

    gm, gn, gk = Mp // tm, Np // tn, Kp // tk

    flops = 2 * Mp * Np * Kp + 2 * Mp * r * Np
    bytes_accessed = (xp.size * xp.dtype.itemsize
                      + w_t.size * w_t.dtype.itemsize
                      + hp.size * hp.dtype.itemsize
                      + bb_t.size * bb_t.dtype.itemsize
                      + b2.size * b2.dtype.itemsize
                      + Mp * Np * jnp.dtype(x.dtype).itemsize)

    out = pl.pallas_call(
        _lora_linear_kernel,
        out_shape=jax.ShapeDtypeStruct((Mp, Np), x.dtype),
        grid_spec=pltpu.PrefetchScalarGridSpec(
            num_scalar_prefetch=0,
            grid=(gm, gn, gk),
            in_specs=[
                pl.BlockSpec((tm, tk), lambda i, j, k: (i, k)),   # x tile
                pl.BlockSpec((tk, tn), lambda i, j, k: (k, j)),   # W^T tile
                pl.BlockSpec((1, tn), lambda i, j, k: (0, j)),    # bias (lane-dense, f32)
                pl.BlockSpec((tm, r), lambda i, j, k: (i, 0)),    # h = x @ A^T (precomputed)
                pl.BlockSpec((r, tn), lambda i, j, k: (0, j)),    # scaled B^T tile
            ],
            out_specs=pl.BlockSpec((tm, tn), lambda i, j, k: (i, j)),
            scratch_shapes=[
                pltpu.VMEM((tm, tn), jnp.float32),   # f32 accumulator (bias-initialized at k==0)
            ],
        ),
        compiler_params=pltpu.CompilerParams(
            # No cross-j state anymore -> both i and j shard across TensorCores on v7x.
            dimension_semantics=("parallel", "parallel", "arbitrary"),
            vmem_limit_bytes=48 * 1024 * 1024),
        cost_estimate=pl.CostEstimate(flops=flops, transcendentals=0,
                                      bytes_accessed=bytes_accessed),
    )(xp, w_t, b2, hp, bb_t)

    return out[:M, :N].reshape(*lead, N)


if __name__ == "__main__":
    def reference(x, W, b, A, B, scaling):
        return (jnp.matmul(x, W.T, precision="highest") + b
                + scaling * jnp.matmul(jnp.matmul(x, A.T, precision="highest"),
                                       B.T, precision="highest"))

    key = jax.random.PRNGKey(0)
    ks = jax.random.split(key, 10)

    # ---- Test 1: module-consistent small shapes, f32 compute path (tight check) ----
    batch, seq, in_f, out_f, rank, alpha = 2, 8, 32, 64, 16, 16
    scaling = alpha / rank
    bound = 1.0 / math.sqrt(in_f)
    x = jax.random.normal(ks[0], (batch, seq, in_f), jnp.float32)
    W = jax.random.uniform(ks[1], (out_f, in_f), minval=-bound, maxval=bound)
    b = jax.random.uniform(ks[2], (out_f,), minval=-bound, maxval=bound)
    A = jax.random.uniform(ks[3], (rank, in_f), minval=-bound, maxval=bound)
    # The module inits lora_B to zeros; use a small nonzero B so the LoRA path is actually
    # exercised by the numerical check (semantics identical).
    B = 0.05 * jax.random.normal(ks[4], (out_f, rank), jnp.float32)

    params_f32 = prepare_lora_weights(W, b, A, B, alpha=alpha, rank=rank,
                                      compute_dtype=jnp.float32)
    out1 = lora_linear(x, params_f32)
    jax.block_until_ready(out1)
    ref1 = reference(x, W, b, A, B, scaling)
    assert out1.shape == (batch, seq, out_f)
    assert jnp.allclose(out1, ref1, atol=1e-3, rtol=1e-3), "f32 small-shape mismatch"

    # ---- Test 2: non-divisible dims + real multi-tile grid, default bf16 compute
    #      (exercises padding, K-reduction accumulator, bias init, epilogue) ----
    batch2, seq2, in2, out2 = 2, 20, 300, 200
    bound2 = 1.0 / math.sqrt(in2)
    x2 = jax.random.normal(ks[5], (batch2, seq2, in2), jnp.float32)
    W2 = jax.random.uniform(ks[6], (out2, in2), minval=-bound2, maxval=bound2)
    b2v = jax.random.uniform(ks[7], (out2,), minval=-bound2, maxval=bound2)
    A2 = jax.random.uniform(ks[8], (rank, in2), minval=-bound2, maxval=bound2)
    B2 = 0.05 * jax.random.normal(ks[9], (out2, rank), jnp.float32)

    params2 = prepare_lora_weights(W2, b2v, A2, B2, alpha=alpha, rank=rank,
                                   tn=128, tk=128)                    # bf16 compute (default)
    out2_ = lora_linear(x2, params2, tm=16)                           # grid = (3, 2, 3)
    jax.block_until_ready(out2_)
    ref2 = reference(x2, W2, b2v, A2, B2, scaling)
    assert out2_.shape == (batch2, seq2, out2)
    assert out2_.dtype == jnp.float32
    assert jnp.allclose(out2_, ref2, atol=5e-2, rtol=5e-2), "tiled/padded bf16-compute mismatch"

    # ---- Test 3: bf16 inputs and outputs (recommended serving dtype), f32 accumulation ----
    xb = x2.astype(jnp.bfloat16)
    params_b = prepare_lora_weights(W2.astype(jnp.bfloat16), b2v.astype(jnp.bfloat16),
                                    A2.astype(jnp.bfloat16), B2.astype(jnp.bfloat16),
                                    alpha=alpha, rank=rank, tn=128, tk=128)
    out_b = lora_linear(xb, params_b, tm=16)
    jax.block_until_ready(out_b)
    assert out_b.dtype == jnp.bfloat16
    assert jnp.allclose(out_b.astype(jnp.float32), ref2, atol=7e-2, rtol=7e-2), "bf16 mismatch"

    print("KERNEL_OK")
</pallas_src>

<mosaic_0001>
module attributes {stable_mosaic.version = 11 : i64} {
  func.func @_lora_linear_kernel(%arg0: i32, %arg1: i32, %arg2: i32, %arg3: memref<16x128xf32, #tpu.memory_space<vmem>>, %arg4: memref<128x128xf32, #tpu.memory_space<vmem>>, %arg5: memref<1x128xf32, #tpu.memory_space<vmem>>, %arg6: memref<16x16xf32, #tpu.memory_space<vmem>>, %arg7: memref<16x128xf32, #tpu.memory_space<vmem>>, %arg8: memref<16x128xf32, #tpu.memory_space<vmem>>, %arg9: memref<16x128xf32, #tpu.memory_space<vmem>>) attributes {dimension_semantics = [#tpu.dimension_semantics<parallel>, #tpu.dimension_semantics<parallel>, #tpu.dimension_semantics<arbitrary>], iteration_bounds = array<i64: 1, 1, 1>, scalar_prefetch = 0 : i64, scratch_operands = 1 : i64, tpu.core_type = #tpu.core_type<tc>, window_params = [{transform_indices = @transform_0, window_bounds = array<i64: 16, 128>}, {transform_indices = @transform_1, window_bounds = array<i64: 128, 128>}, {transform_indices = @transform_2, window_bounds = array<i64: 1, 128>}, {transform_indices = @transform_3, window_bounds = array<i64: 16, 16>}, {transform_indices = @transform_4, window_bounds = array<i64: 16, 128>}, {transform_indices = @transform_5, window_bounds = array<i64: 16, 128>}]} {
    %c0_i32 = arith.constant 0 : i32
    %0 = arith.cmpi eq, %arg2, %c0_i32 : i32
    %1 = arith.extui %0 : i1 to i32
    %c0_i32_0 = arith.constant 0 : i32
    %2 = arith.cmpi ne, %1, %c0_i32_0 : i32
    scf.if %2 {
      %c0_10 = arith.constant 0 : index
      %c0_11 = arith.constant 0 : index
      %12 = vector.load %arg5[%c0_10, %c0_11] : memref<1x128xf32, #tpu.memory_space<vmem>>, vector<1x128xf32>
      %13 = vector.shape_cast %12 : vector<1x128xf32> to vector<1x128xf32>
      %14 = vector.broadcast %13 : vector<1x128xf32> to vector<16x128xf32>
      %c0_12 = arith.constant 0 : index
      %c0_13 = arith.constant 0 : index
      %15 = vector.load %arg9[%c0_12, %c0_13] : memref<16x128xf32, #tpu.memory_space<vmem>>, vector<16x128xf32>
      tpu.vector_store %arg9[%c0_12, %c0_13], %14 {strides = array<i32>} : memref<16x128xf32, #tpu.memory_space<vmem>>, vector<16x128xf32>,
    } else {
    }
    %c0 = arith.constant 0 : index
    %c0_1 = arith.constant 0 : index
    %3 = vector.load %arg9[%c0, %c0_1] : memref<16x128xf32, #tpu.memory_space<vmem>>, vector<16x128xf32>
    %c0_2 = arith.constant 0 : index
    %c0_3 = arith.constant 0 : index
    %4 = vector.load %arg3[%c0_2, %c0_3] : memref<16x128xf32, #tpu.memory_space<vmem>>, vector<16x128xf32>
    %c0_4 = arith.constant 0 : index
    %c0_5 = arith.constant 0 : index
    %5 = vector.load %arg4[%c0_4, %c0_5] : memref<128x128xf32, #tpu.memory_space<vmem>>, vector<128x128xf32>
    %cst = arith.constant dense<0.000000e+00> : vector<16x128xf32>
    %6 = tpu.matmul %4, %5, %cst {dimension_numbers = #tpu.dot_dimension_numbers<[1], [0], [0], [1], [0, 0, 1, 1], [], []>} : vector<16x128xf32>, vector<128x128xf32>, vector<16x128xf32> -> vector<16x128xf32>
    %7 = arith.addf %3, %6 : vector<16x128xf32>
    %c0_6 = arith.constant 0 : index
    %c0_7 = arith.constant 0 : index
    %8 = vector.load %arg9[%c0_6, %c0_7] : memref<16x128xf32, #tpu.memory_space<vmem>>, vector<16x128xf32>
    tpu.vector_store %arg9[%c0_6, %c0_7], %7 {strides = array<i32>} : memref<16x128xf32, #tpu.memory_space<vmem>>, vector<16x128xf32>,
    %c0_i32_8 = arith.constant 0 : i32
    %9 = arith.cmpi eq, %arg2, %c0_i32_8 : i32
    %10 = arith.extui %9 : i1 to i32
    %c0_i32_9 = arith.constant 0 : i32
    %11 = arith.cmpi ne, %10, %c0_i32_9 : i32
    scf.if %11 {
      %c0_10 = arith.constant 0 : index
      %c0_11 = arith.constant 0 : index
      %12 = vector.load %arg9[%c0_10, %c0_11] : memref<16x128xf32, #tpu.memory_space<vmem>>, vector<16x128xf32>
      %c0_12 = arith.constant 0 : index
      %c0_13 = arith.constant 0 : index
      %13 = vector.load %arg6[%c0_12, %c0_13] : memref<16x16xf32, #tpu.memory_space<vmem>>, vector<16x16xf32>
      %c0_14 = arith.constant 0 : index
      %c0_15 = arith.constant 0 : index
      %14 = vector.load %arg7[%c0_14, %c0_15] : memref<16x128xf32, #tpu.memory_space<vmem>>, vector<16x128xf32>
      %cst_16 = arith.constant dense<0.000000e+00> : vector<16x128xf32>
      %15 = tpu.matmul %13, %14, %cst_16 {dimension_numbers = #tpu.dot_dimension_numbers<[1], [0], [0], [1], [0, 0, 1, 1], [], []>} : vector<16x16xf32>, vector<16x128xf32>, vector<16x128xf32> -> vector<16x128xf32>
      %16 = arith.addf %12, %15 : vector<16x128xf32>
      %c0_17 = arith.constant 0 : index
      %c0_18 = arith.constant 0 : index
      %17 = vector.load %arg8[%c0_17, %c0_18] : memref<16x128xf32, #tpu.memory_space<vmem>>, vector<16x128xf32>
      tpu.vector_store %arg8[%c0_17, %c0_18], %16 {strides = array<i32>} : memref<16x128xf32, #tpu.memory_space<vmem>>, vector<16x128xf32>,
    } else {
    }
    return
  }
  func.func @transform_0(%arg0: i32, %arg1: i32, %arg2: i32) -> (i32, i32) {
    %c0_i32 = arith.constant 0 : i32
    return %arg0, %arg2 : i32, i32
  }
  func.func @transform_1(%arg0: i32, %arg1: i32, %arg2: i32) -> (i32, i32) {
    %c0_i32 = arith.constant 0 : i32
    return %arg2, %arg1 : i32, i32
  }
  func.func @transform_2(%arg0: i32, %arg1: i32, %arg2: i32) -> (i32, i32) {
    %c0_i32 = arith.constant 0 : i32
    %c0_i32_0 = arith.constant 0 : i32
    return %c0_i32, %arg1 : i32, i32
  }
  func.func @transform_3(%arg0: i32, %arg1: i32, %arg2: i32) -> (i32, i32) {
    %c0_i32 = arith.constant 0 : i32
    %c0_i32_0 = arith.constant 0 : i32
    return %arg0, %c0_i32 : i32, i32
  }
  func.func @transform_4(%arg0: i32, %arg1: i32, %arg2: i32) -> (i32, i32) {
    %c0_i32 = arith.constant 0 : i32
    %c0_i32_0 = arith.constant 0 : i32
    return %c0_i32, %arg1 : i32, i32
  }
  func.func @transform_5(%arg0: i32, %arg1: i32, %arg2: i32) -> (i32, i32) {
    %c0_i32 = arith.constant 0 : i32
    return %arg0, %arg1 : i32, i32
  }
}

</mosaic_0001>

<bundles_post_ra>
// kernel: tpu_custom_call.1
= control target key start
LH: loop header
LB: loop body
LE: loop exit
PB: predicated region body
PF: predicated region fallthrough
CT: control target
= control target key end

     0   :  { %10 = vsyncpa [#allocation4], 0  ;;  %s665_s0 = inlined_call_operand.hbm [shape: f32[16,128], index: 0, kind: input, shape index: {}]   ;;  %s666_s1 = inlined_call_operand.hbm [shape: f32[128,128], index: 1, kind: input, shape index: {}]   ;;  %s667_s2 = inlined_call_operand.vmem [shape: f32[1,128], index: 2, kind: input, shape index: {}]   ;;  %s668_s3 = inlined_call_operand.hbm [shape: f32[16,16], index: 3, kind: input, shape index: {}]   ;;  %s669_s4 = inlined_call_operand.hbm [shape: f32[16,128], index: 4, kind: input, shape index: {}]   ;;  %s670_s5 = inlined_call_operand.hbm [shape: f32[16,128], index: 5, kind: output, shape index: {}]  }
   0x1   :  { %11 = vsyncpa [#allocation7], 0 }
   0x2   :  { %12 = vsyncpa [#allocation10], 0 }
   0x3   :  { %13 = vsyncpa [#allocation5], 0  ;;  %s534_s18 = smov [#allocation6]   ;;  %s535_s20 = smov [#allocation3]  }
   0x4   :  { %s31_s19 = sshll.u32 %s534_s18, 4  ;;  %s19_s21 = sshll.u32 %s535_s20, 4  ;;  %s32_s19 = int_to_ptr.vmem [resolvable:$true] %s31_s19  ;;  %s571_s21 = int_to_ptr.vmem [resolvable:$true] %s19_s21 }
   0x5   :  { %s416_s24 = scalar_lea.hbm %s666_s1, 2048 }
   0x6   :  { %p417_p0 = scmp.ne.s32.totalorder %s666_s1, %s416_s24  ;;  %p420_p1 = scmp.lt.u32.totalorder %s416_s24, %s666_s1 }
   0x8   :  { %p422_p2 = pnand %p420_p1, %p417_p0 }
   0xa   :  { %425 = shalt.err (!%p422_p2)
}
   0xb   :  { %s426_s29 = scalar_lea.vmem %s32_s19, 2048  ;;  %p431_p4 = scmp.lt.s32.totalorder %s32_s19, %s32_s19 }
   0xc   :  { %p427_p3 = scmp.ne.s32.totalorder %s32_s19, %s426_s29  ;;  %p432_p5 = scmp.lt.s32.totalorder %s426_s29, %s426_s29 }
   0xe   :  { %p433_p6 = por %p432_p5, %p431_p4 }
  0x10   :  { %p434_p7 = pnand %p433_p6, %p427_p3 }
  0x12   :  { %437 = shalt.err (!%p434_p7)
}
  0x13   :  { %s536_s30 = smov 128   ;;  %s537_s6 = smov 8  }
  0x14   :  { %37 = dma.hbm_to_vmem [thread:$0]  %s666_s1, 2048, %s32_s19, [#allocation7], %s536_s30, %s536_s30, %s537_s6  }
  0x15   :  { %s438_s11 = scalar_lea.hbm %s665_s0, 256 }
  0x16   :  { %p439_p8 = scmp.ne.s32.totalorder %s665_s0, %s438_s11  ;;  %p442_p9 = scmp.lt.u32.totalorder %s438_s11, %s665_s0 }
  0x18   :  { %p444_p10 = pnand %p442_p9, %p439_p8 }
  0x1a   :  { %447 = shalt.err (!%p444_p10)
}
  0x1b   :  { %s448_s16 = scalar_lea.vmem %s571_s21, 256  ;;  %p453_p12 = scmp.lt.s32.totalorder %s571_s21, %s571_s21 }
  0x1c   :  { %p449_p11 = scmp.ne.s32.totalorder %s571_s21, %s448_s16  ;;  %p454_p13 = scmp.lt.s32.totalorder %s448_s16, %s448_s16 }
  0x1e   :  { %p455_p0 = por %p454_p13, %p453_p12 }
  0x20   :  { %p456_p1 = pnand %p455_p0, %p449_p11 }
  0x22   :  { %459 = shalt.err (!%p456_p1)
}
  0x23   :  { %25 = dma.hbm_to_vmem [thread:$0]  %s665_s0, 256, %s571_s21, [#allocation4], %s536_s30, %s536_s30, %s537_s6  }
  0x24   :  { %s538_s18 = smov [#allocation8]   ;;  %s539_s20 = smov [#allocation9]  }
  0x25   :  { %s45_s19 = sshll.u32 %s538_s18, 4  ;;  %s57_s22 = sshll.u32 %s539_s20, 4  ;;  %s46_s19 = int_to_ptr.vmem [resolvable:$true] %s45_s19  ;;  %s608_s22 = int_to_ptr.vmem [resolvable:$true] %s57_s22 }
  0x26   :  { %s460_s25 = scalar_lea.hbm %s668_s3, 256 }
  0x27   :  { %p461_p2 = scmp.ne.s32.totalorder %s668_s3, %s460_s25  ;;  %p464_p3 = scmp.lt.u32.totalorder %s460_s25, %s668_s3 }
  0x29   :  { %p466_p4 = pnand %p464_p3, %p461_p2 }
  0x2b   :  { %469 = shalt.err (!%p466_p4)
}
  0x2c   :  { %s470_s0 = scalar_lea.vmem %s46_s19, 256  ;;  %p475_p6 = scmp.lt.s32.totalorder %s46_s19, %s46_s19 }
  0x2d   :  { %p471_p5 = scmp.ne.s32.totalorder %s46_s19, %s470_s0  ;;  %p476_p7 = scmp.lt.s32.totalorder %s470_s0, %s470_s0 }
  0x2f   :  { %p477_p8 = por %p476_p7, %p475_p6 }
  0x31   :  { %p478_p9 = pnand %p477_p8, %p471_p5 }
  0x33   :  { %481 = shalt.err (!%p478_p9)
}
  0x34   :  { %51 = dma.hbm_to_vmem [thread:$0]  %s668_s3, 256, %s46_s19, [#allocation7], %s536_s30, %s536_s30, %s537_s6  }
  0x35   :  { %s482_s10 = scalar_lea.hbm %s669_s4, 256 }
  0x36   :  { %p483_p10 = scmp.ne.s32.totalorder %s669_s4, %s482_s10  ;;  %p486_p11 = scmp.lt.u32.totalorder %s482_s10, %s669_s4 }
  0x38   :  { %p488_p12 = pnand %p486_p11, %p483_p10 }
  0x3a   :  { %491 = shalt.err (!%p488_p12)
}
  0x3b   :  { %s492_s15 = scalar_lea.vmem %s608_s22, 256  ;;  %p497_p0 = scmp.lt.s32.totalorder %s608_s22, %s608_s22 }
  0x3c   :  { %p493_p13 = scmp.ne.s32.totalorder %s608_s22, %s492_s15  ;;  %p498_p1 = scmp.lt.s32.totalorder %s492_s15, %s492_s15 }
  0x3e   :  { %p499_p2 = por %p498_p1, %p497_p0 }
  0x40   :  { %p500_p3 = pnand %p499_p2, %p493_p13 }
  0x42   :  { %503 = shalt.err (!%p500_p3)
}
  0x43   :  { %63 = dma.hbm_to_vmem [thread:$0]  %s669_s4, 256, %s608_s22, [#allocation10], %s536_s30, %s536_s30, %s537_s6  }
  0x44   :  { %526 = dma.done.wait [#allocation4], 256  }
  0x45   :  { %527 = vsyncadd [#allocation4], 4294967040 }
  0x46   :  { %528 = dma.done.wait [#allocation7], 2304  }
  0x47   :  { %529 = vsyncadd [#allocation7], 4294964992 }
  0x48   :  { %530 = dma.done.wait [#allocation10], 256  }
  0x49   :  { %531 = vsyncadd [#allocation10], 4294967040  ;;  %v93_v0 = vld [vmem:[#allocation6] sm:$0xff]  ;;  %v94_v1 = vld [vmem:[#allocation6 + $0x8] sm:$0xff]  ;;  %vm197_vm0 = vcmask 130048   ;;  %s540_s17 = smov [#allocation11]  }
  0x4a   :  { %v95_v2 = vld [vmem:[#allocation6 + $0x10] sm:$0xff]  ;;  %v369_v3 = vpack.c.bf16 %v94_v1, %v93_v0  ;;  %v96_v4 = vld [vmem:[#allocation6 + $0x18] sm:$0xff]  ;;  %v97_v6 = vld [vmem:[#allocation6 + $0x20] sm:$0xff]  ;;  %s288_s18 = sshll.u32 %s540_s17, 4  ;;  %s289_s18 = int_to_ptr.vmem [resolvable:$true] %s288_s18 }
  0x4b   :  { %v373_v5 = vpack.c.bf16 %v96_v4, %v95_v2  ;;  %v98_v7 = vld [vmem:[#allocation6 + $0x28] sm:$0xff]  ;;  %v99_v9 = vld [vmem:[#allocation6 + $0x30] sm:$0xff]  ;;  %v196_v11 = vld [vmem:[#allocation9 + $0x8] sm:$0xff]  ;;  %s504_s19 = scalar_lea.vmem %s289_s18, 256  ;;  %p509_p5 = scmp.lt.s32.totalorder %s289_s18, %s289_s18 }
  0x4c   :  { %370 = vmatprep.subr.bf16.mxu1 %v369_v3  ;;  %v377_v8 = vpack.c.bf16 %v98_v7, %v97_v6  ;;  %v195_v10 = vld [vmem:[#allocation9] sm:$0xff]  ;;  %v100_v12 = vld [vmem:[#allocation6 + $0x38] sm:$0xff]  ;;  %v193_v15 = vld [vmem:[#allocation8] sm:$0xff]  ;;  %p505_p4 = scmp.ne.s32.totalorder %s289_s18, %s504_s19  ;;  %p510_p6 = scmp.lt.s32.totalorder %s504_s19, %s504_s19 }
  0x4d   :  { %372 = vmatpush3.bf16.msra.mxu1 %v369_v3  ;;  %v401_v13 = vpack.c.bf16 %v196_v11, %v195_v10  ;;  %v91_v14 = vld [vmem:[#allocation3] sm:$0xff]  ;;  %366 = vmatprep.mubr.msk.f32.mxu0 %vm197_vm0, %v193_v15  ;;  %v381_v16 = vpack.c.bf16 %v100_v12, %v99_v9  ;;  %v194_v17 = vld [vmem:[#allocation8 + $0x8] sm:$0xff]  ;;  %v101_v18 = vld [vmem:[#allocation6 + $0x40] sm:$0xff] }
  0x4e   :  { %374 = vmatprep.subr.bf16.mxu1 %v373_v5  ;;  %359 = vmatprep.mubr.f32.mxu1 %v91_v14  ;;  %v102_v19 = vld [vmem:[#allocation6 + $0x48] sm:$0xff]  ;;  %v103_v21 = vld [vmem:[#allocation6 + $0x50] sm:$0xff]  ;;  %v104_v22 = vld [vmem:[#allocation6 + $0x58] sm:$0xff]  ;;  %p511_p7 = por %p510_p6, %p509_p5 }
  0x4f   :  { %402 = vmatprep.subr.bf16.mxu0 %v401_v13  ;;  %v385_v20 = vpack.c.bf16 %v102_v19, %v101_v18  ;;  %v389_v23 = vpack.c.bf16 %v104_v22, %v103_v21  ;;  %v105_v24 = vld [vmem:[#allocation6 + $0x60] sm:$0xff]  ;;  %v106_v25 = vld [vmem:[#allocation6 + $0x68] sm:$0xff]  ;;  %v107_v27 = vld [vmem:[#allocation6 + $0x70] sm:$0xff] }
  0x50   :  { %404 = vmatpush3.bf16.msra.mxu0 %v401_v13  ;;  %v393_v26 = vpack.c.bf16 %v106_v25, %v105_v24  ;;  %v108_v28 = vld [vmem:[#allocation6 + $0x78] sm:$0xff]  ;;  %v302_v33 = vld [vmem:[%s667_s2] ss:$0 sm:$0xff]  ;;  %p512_p8 = pnand %p511_p7, %p505_p4 }
  0x51   :  { %376 = vmatpush3.bf16.msra.mxu1 %v373_v5  ;;  %v397_v29 = vpack.c.bf16 %v108_v28, %v107_v27  ;;  %v92_v30 = vld [vmem:[#allocation3 + $0x8] sm:$0xff] }
  0x52   :  { %378 = vmatprep.subr.bf16.mxu1 %v377_v8 }
  0x53   :  { %367 = vmatmul.mubr.msk.f32.vlgmr.msra.gmra.mrb[0].mxu0 %vm197_vm0, %v194_v17 }
  0x55   :  { %380 = vmatpush3.bf16.msra.mxu1 %v377_v8 }
  0x56   :  { %382 = vmatprep.subr.bf16.mxu1 %v381_v16 }
  0x59   :  { %384 = vmatpush3.bf16.msra.mxu1 %v381_v16 }
  0x5a   :  { %386 = vmatprep.subr.bf16.mxu1 %v385_v20 }
  0x5d   :  { %388 = vmatpush3.bf16.msra.mxu1 %v385_v20 }
  0x5e   :  { %390 = vmatprep.subr.bf16.mxu1 %v389_v23 }
  0x61   :  { %392 = vmatpush3.bf16.msra.mxu1 %v389_v23 }
  0x62   :  { %394 = vmatprep.subr.bf16.mxu1 %v393_v26 }
  0x65   :  { %396 = vmatpush3.bf16.msra.mxu1 %v393_v26 }
  0x66   :  { %398 = vmatprep.subr.bf16.mxu1 %v397_v29 }
  0x69   :  { %400 = vmatpush3.bf16.msra.mxu1 %v397_v29 }
  0x6c   :  { %360 = vmatmul.mubr.f32.vlgmr.msra.gmra.mrb[0].mxu1 %v92_v30 }
 0x126   :  { %v368_v31 = vpop.f32.mrb[0].mxu0 }
 0x127   :  { %v270_v32 = vpop.f32.mrb[1].mxu0 }
 0x13f   :  { %v361_v34 = vpop.f32.mrb[0].mxu1 }
 0x140   :  { %v185_v35 = vadd.f32 %v361_v34, %v302_v33  ;;  %v175_v36 = vpop.f32.mrb[1].mxu1 }
 0x141   :  { %v184_v37 = vadd.f32 %v302_v33, %v175_v36 }
 0x142   :  { %v280_v38 = vadd.f32 %v368_v31, %v185_v35 }
 0x143   :  { %v279_v39 = vadd.f32 %v270_v32, %v184_v37 }
 0x144   :  { %282 = vst [vmem:[#allocation11 + $0x8] sm:$0xff] %v280_v38 }
 0x145   :  { %281 = vst [vmem:[#allocation11] sm:$0xff] %v279_v39 }
 0x146   :  { %515 = shalt.err (!%p512_p8)
}
 0x147   :  { %s516_s22 = scalar_lea.hbm %s670_s5, 256 }
 0x148   :  { %p517_p9 = scmp.ne.s32.totalorder %s670_s5, %s516_s22  ;;  %p520_p10 = scmp.lt.u32.totalorder %s516_s22, %s670_s5 }
 0x14a   :  { %p522_p11 = pnand %p520_p10, %p517_p9 }
 0x14c   :  { %525 = shalt.err (!%p522_p11)
}
 0x14d   :  { %294 = dma.vmem_to_hbm [thread:$0]  %s289_s18, 256, %s670_s5, [#allocation5], %s536_s30, %s536_s30, %s537_s6  }
 0x14e   :  { %532 = dma.done.wait [#allocation5], 256  }
 0x14f   :  { %533 = vsyncadd [#allocation5], 4294967040 }
 0x150   :  { %298 = vsyncpa [#allocation4], 1 }
 0x151   :  { %299 = vsyncpa [#allocation7], 1 }
 0x152   :  { %300 = vsyncpa [#allocation10], 1 }
 0x153   :  { %301 = vsyncpa [#allocation5], 1 }

</bundles_post_ra>
